<compile_context>
chip_gen: v6e
topology: v6e:2x2x1
jax: 0.10.0
libtpu: 0.0.40
codegen_flags: <defaults>
</compile_context>

<pallas_src>
import functools

import jax
import jax.numpy as jnp
from jax.experimental import pallas as pl
from jax.experimental.pallas import tpu as pltpu


# --------------------------------------------------------------------------
# Small helpers
# --------------------------------------------------------------------------
def _vmem_spec():
    return pl.BlockSpec(memory_space=pltpu.MemorySpace.VMEM)


def _round_up(x, m):
    return (x + m - 1) // m * m


def _row_tile(n):
    """Largest tile from (512, 256, 128) dividing n (n is padded to 128*k)."""
    for c in (512, 256, 128):
        if c <= n and n % c == 0:
            return c
    return n


def _maybe_vmem_limit(resident_bytes):
    """Raise the scoped VMEM budget only when the resident working set needs it."""
    need = int(resident_bytes) + (4 << 20)
    if need <= (16 << 20):
        return None
    try:
        cap = int(pltpu.get_tpu_info().vmem_capacity_bytes)
    except Exception:
        cap = 64 << 20
    return int(min(need, cap))


# --------------------------------------------------------------------------
# pre_mp Linear, row-tiled (feature dim padded 5 -> 8 by caller).
# --------------------------------------------------------------------------
def _linear_kernel(x_ref, w_ref, b_ref, o_ref):
    o_ref[...] = (jnp.dot(x_ref[...], w_ref[...],
                          preferred_element_type=jnp.float32) + b_ref[...])


def linear_rows(x, w, b):
    m, kdim = x.shape
    n = w.shape[1]
    tm = _row_tile(m)
    if m // tm < 2:                      # keep >= 2 parallel steps (v7x dual-TC)
        tm = max(8, m // 2)
    return pl.pallas_call(
        _linear_kernel,
        out_shape=jax.ShapeDtypeStruct((m, n), jnp.float32),
        grid=(m // tm,),
        in_specs=[pl.BlockSpec((tm, kdim), lambda i: (i, 0)),
                  _vmem_spec(), _vmem_spec()],
        out_specs=pl.BlockSpec((tm, n), lambda i: (i, 0)),
        compiler_params=pltpu.CompilerParams(dimension_semantics=("parallel",)),
    )(x, w, b)


# --------------------------------------------------------------------------
# Fused GConvLSTM layer (H = C = 0 exploited):
#   grid step 0 : T1 = L_hat @ X           -> bf16 VMEM scratch (never in HBM)
#   every step  : ACC = L_hat[rows] @ T1,  T2 = 2*ACC - X[rows]
#                 PRE = X@W0 + T1@W1 + T2@W2 + b   (three bf16 MXU dots)
#                 i = sigmoid(pre_i); c = i * tanh(pre_c)
#                 o = sigmoid(pre_o + w_c_o * c);  h = relu(o * tanh(c))
# L_hat, X and the packed weights are untiled VMEM-resident operands, so L_hat
# is streamed from HBM once per layer (not once per (i,k) tile, not twice).
# --------------------------------------------------------------------------
def _layer_kernel(lhat_ref, x_ref, w0_ref, w1_ref, w2_ref, bias_ref, wco_ref,
                  o_ref, t1_ref, *, tm, hid):
    i = pl.program_id(0)

    @pl.when(i == 0)
    def _():
        t1_ref[...] = jnp.dot(lhat_ref[...], x_ref[...],
                              preferred_element_type=jnp.float32
                              ).astype(jnp.bfloat16)

    rows = pl.ds(pl.multiple_of(i * tm, tm), tm)
    l_i = lhat_ref[rows, :]                       # (tm, N)   bf16
    x_i = x_ref[rows, :]                          # (tm, F)   bf16
    t1_i = t1_ref[rows, :]                        # (tm, F)   bf16

    acc = jnp.dot(l_i, t1_ref[...], preferred_element_type=jnp.float32)
    t2 = 2.0 * acc - x_i.astype(jnp.float32)      # Chebyshev order 2

    pre = (jnp.dot(x_i, w0_ref[...], preferred_element_type=jnp.float32)
           + jnp.dot(t1_i, w1_ref[...], preferred_element_type=jnp.float32)
           + jnp.dot(t2.astype(jnp.bfloat16), w2_ref[...],
                     preferred_element_type=jnp.float32)
           + bias_ref[...])                       # (tm, 3*hid), gates (i, c, o)

    # C == 0: forget gate and w_c_i/w_c_f vanish; only w_c_o survives.
    i_g = jax.nn.sigmoid(pre[:, 0 * hid:1 * hid])
    c_new = i_g * jnp.tanh(pre[:, 1 * hid:2 * hid])
    o_g = jax.nn.sigmoid(pre[:, 2 * hid:3 * hid] + wco_ref[...] * c_new)
    h_new = o_g * jnp.tanh(c_new)
    o_ref[...] = jnp.maximum(h_new, 0.0)          # GNNEncoder's trailing F.relu


def gconv_lstm_layer(lhat16, x16, w0, w1, w2, bias, wco, hid):
    n, fin = x16.shape
    tm = _row_tile(n)
    resident = (lhat16.size * 2 + 2 * x16.size * 2
                + (w0.size + w1.size + w2.size) * 2 + 4 * tm * hid * 4)
    cost = pl.CostEstimate(
        flops=int(4 * n * n * fin + 6 * n * fin * 3 * hid),
        transcendentals=int(4 * n * hid),
        bytes_accessed=int(2 * n * n + 2 * n * fin + 4 * n * hid
                           + 2 * 3 * fin * 3 * hid))
    return pl.pallas_call(
        functools.partial(_layer_kernel, tm=tm, hid=hid),
        out_shape=jax.ShapeDtypeStruct((n, hid), jnp.float32),
        grid=(n // tm,),
        in_specs=[_vmem_spec() for _ in range(7)],
        out_specs=pl.BlockSpec((tm, hid), lambda i: (i, 0)),
        scratch_shapes=[pltpu.VMEM((n, fin), jnp.bfloat16)],
        compiler_params=pltpu.CompilerParams(
            dimension_semantics=("arbitrary",),   # step 0 fills the T1 scratch
            vmem_limit_bytes=_maybe_vmem_limit(resident)),
        cost_estimate=cost,
    )(lhat16, x16, w0, w1, w2, bias, wco)


# --------------------------------------------------------------------------
# Fused tail: global_add_pool (one-hot matmul, tiled k-reduction over N, bf16)
# + the 4 post_mp Linears and activations in the finalize step.
# --------------------------------------------------------------------------
def _tail_kernel(pool_ref, emb_ref, w1, b1, w2, b2, w3, b3, w4, b4,
                 o_ref, pooled_ref):
    k = pl.program_id(0)

    @pl.when(k == 0)
    def _():
        pooled_ref[...] = jnp.zeros_like(pooled_ref)

    pooled_ref[...] += jnp.dot(pool_ref[...], emb_ref[...],
                               preferred_element_type=jnp.float32)

    @pl.when(k == pl.num_programs(0) - 1)
    def _():
        y = jnp.dot(pooled_ref[...], w1[...],
                    preferred_element_type=jnp.float32) + b1[...]
        y = jnp.where(y >= 0.0, y, 0.1 * y)        # Dropout(eval)=id -> LeakyReLU(0.1)
        y = jnp.maximum(jnp.dot(y, w2[...], preferred_element_type=jnp.float32)
                        + b2[...], 0.0)
        y = jnp.maximum(jnp.dot(y, w3[...], preferred_element_type=jnp.float32)
                        + b3[...], 0.0)
        o_ref[...] = jnp.dot(y, w4[...], preferred_element_type=jnp.float32) + b4[...]


def pooled_mlp(pool16, emb16, w1, b1, w2, b2, w3, b3, w4, b4):
    n_graphs, n = pool16.shape
    post_in = emb16.shape[1]
    out_dim = w4.shape[1]
    tk = _row_tile(n)
    return pl.pallas_call(
        _tail_kernel,
        out_shape=jax.ShapeDtypeStruct((n_graphs, out_dim), jnp.float32),
        grid=(n // tk,),
        in_specs=[pl.BlockSpec((n_graphs, tk), lambda k: (0, k)),
                  pl.BlockSpec((tk, post_in), lambda k: (k, 0))]
                 + [_vmem_spec() for _ in range(8)],
        out_specs=pl.BlockSpec((n_graphs, out_dim), lambda k: (0, 0)),
        scratch_shapes=[pltpu.VMEM((n_graphs, post_in), jnp.float32)],
        compiler_params=pltpu.CompilerParams(dimension_semantics=("arbitrary",)),
    )(pool16, emb16, w1, b1, w2, b2, w3, b3, w4, b4)


# --------------------------------------------------------------------------
# Glue: dense scaled Laplacian (PyG get_laplacian "sym" + ChebConv scaling,
# lambda_max = 2  =>  L_hat = -D^{-1/2} A D^{-1/2}, zero diagonal).
# --------------------------------------------------------------------------
def scaled_laplacian(edge_index, edge_weight, num_nodes):
    src, dst = edge_index[0], edge_index[1]
    deg = jnp.zeros((num_nodes,), jnp.float32).at[src].add(edge_weight)
    dinv = jnp.where(deg > 0, 1.0 / jnp.sqrt(deg), 0.0)
    wn = dinv[src] * edge_weight * dinv[dst]
    return jnp.zeros((num_nodes, num_nodes), jnp.float32).at[dst, src].add(-wn)


# --------------------------------------------------------------------------
# Host-side fused-weight packing (H = C = 0):
#   gate columns (i, c, o); Chebyshev-order row blocks W0/W1/W2 of shape
#   (fin, 3*hid).  conv_h only contributes its bias.  The learnable-skip
#   sigmoid scale s (per x-column) is folded into every order's rows — valid
#   because T_k(L)(X diag(s)) = (T_k(L)X) diag(s).
# --------------------------------------------------------------------------
def _pack_gate_weights(wx, bx, bh, bg, s):
    gates = (0, 2, 3)                    # (input, cell, output); forget is dead
    w_ords = tuple(
        jnp.concatenate([wx[g, r] * s[:, None] for g in gates], axis=1)
           .astype(jnp.bfloat16)
        for r in range(3))
    bias = jnp.concatenate([bx[g] + bh[g] + bg[g] for g in gates], axis=1)
    return w_ords, bias


# --------------------------------------------------------------------------
# Parameter initialization (deterministic, glorot-style; zero biases, matching
# GConvLSTM._set_parameters / ChebConv.reset_parameters).
# --------------------------------------------------------------------------
def _glorot(key, shape):
    fan_in, fan_out = shape[-2], shape[-1]
    limit = (6.0 / (fan_in + fan_out)) ** 0.5
    return jax.random.uniform(key, shape, jnp.float32, -limit, limit)


def init_params(key, hidden_dim, output_dim, n_layers, input_dim=5):
    keys = iter(jax.random.split(key, 64))
    params = {
        "pre_w": _glorot(next(keys), (input_dim, hidden_dim)),
        "pre_b": jnp.zeros((1, hidden_dim), jnp.float32),
        "skip": jnp.ones((n_layers, n_layers), jnp.float32),  # learnable_skip init
    }
    convs = []
    for l in range(n_layers):
        fin = hidden_dim * (l + 1)
        convs.append((
            _glorot(next(keys), (4, 3, fin, hidden_dim)),         # conv_x_{i,f,c,o}
            jnp.zeros((4, 1, hidden_dim), jnp.float32),           # ChebConv biases (x)
            _glorot(next(keys), (4, 3, hidden_dim, hidden_dim)),  # conv_h_{i,f,c,o} (unused: H==0)
            jnp.zeros((4, 1, hidden_dim), jnp.float32),           # ChebConv biases (h)
            _glorot(next(keys), (3, 1, hidden_dim)),              # w_c_{i,f,o}
            jnp.zeros((4, 1, hidden_dim), jnp.float32),           # b_{i,f,c,o}
        ))
    params["convs"] = convs
    post_in = hidden_dim * (n_layers + 1)
    params["post"] = [
        (_glorot(next(keys), (post_in, hidden_dim)), jnp.zeros((1, hidden_dim), jnp.float32)),
        (_glorot(next(keys), (hidden_dim, output_dim)), jnp.zeros((1, output_dim), jnp.float32)),
        (_glorot(next(keys), (output_dim, 256)), jnp.zeros((1, 256), jnp.float32)),
        (_glorot(next(keys), (256, output_dim)), jnp.zeros((1, output_dim), jnp.float32)),
    ]
    return params


# --------------------------------------------------------------------------
# GNNEncoder.forward
# --------------------------------------------------------------------------
def gnn_encoder_forward(params, node_feature, edge_index, edge_weight_list,
                        batch, n_graphs, hidden_dim, n_layers):
    n_real, in_dim = node_feature.shape
    n = max(_round_up(n_real, 128), 128)           # pad nodes (zero L rows/cols)

    lhat = scaled_laplacian(edge_index, edge_weight_list, n_real)
    lhat = jnp.pad(lhat, ((0, n - n_real), (0, n - n_real))).astype(jnp.bfloat16)

    # pre_mp: pad K = 5 -> 8 (zero rows of W keep semantics, sublane-aligned).
    pad_f = (-in_dim) % 8
    x_in = jnp.pad(node_feature, ((0, n - n_real), (0, pad_f)))
    w_in = jnp.pad(params["pre_w"], ((0, pad_f), (0, 0)))
    x = linear_rows(x_in, w_in, params["pre_b"])   # (n, hid) f32

    emb16 = x.astype(jnp.bfloat16)                 # bf16 emb kept in HBM once

    for l in range(n_layers):
        wx, bx, wh, bh, wc, bg = params["convs"][l]   # wh unused (H == 0)
        s = jnp.repeat(jax.nn.sigmoid(params["skip"][l, : l + 1]), hidden_dim)
        (w0, w1, w2), bias = _pack_gate_weights(wx, bx, bh, bg, s)
        h = gconv_lstm_layer(lhat, emb16, w0, w1, w2, bias, wc[2], hidden_dim)
        # TODO(synk): F.dropout is identity (inference); write h directly into a
        # preallocated emb slab via input_output_aliases instead of concatenating.
        emb16 = jnp.concatenate([emb16, h.astype(jnp.bfloat16)], axis=1)

    batch_pad = jnp.concatenate([batch, jnp.full((n - n_real,), -1, jnp.int32)])
    pool16 = (batch_pad[None, :] == jnp.arange(n_graphs)[:, None]).astype(jnp.bfloat16)
    (w1, b1), (w2, b2), (w3, b3), (w4, b4) = params["post"]
    return pooled_mlp(pool16, emb16, w1, b1, w2, b2, w3, b3, w4, b4)


# --------------------------------------------------------------------------
if __name__ == "__main__":
    key = jax.random.PRNGKey(0)
    hidden_dim, output_dim, n_layers = 16, 8, 2
    n_per_graph, n_graphs = 6, 2
    n_nodes = n_per_graph * n_graphs

    k_feat, k_param = jax.random.split(key)
    node_feature = jax.random.normal(k_feat, (n_nodes, 5), jnp.float32)

    # Ring graphs per batch element; reverse edges follow forward edges so the
    # GNNEncoder edge-weight duplication logic lines up.
    src, dst, edge_weight_nested = [], [], []
    for g in range(n_graphs):
        base = g * n_per_graph
        fwd = [(base + a, base + (a + 1) % n_per_graph) for a in range(n_per_graph)]
        w_g = [0.5 + 0.1 * a + 0.3 * g for a in range(n_per_graph)]
        for (a, b) in fwd:
            src.append(a); dst.append(b)
        for (a, b) in fwd:
            src.append(b); dst.append(a)
        edge_weight_nested.append(w_g)

    # Reproduce GNNEncoder's edge-weight duplication + flattening exactly.
    edge_copied_list = []
    for sublist in edge_weight_nested:
        edge_copied_list.append(sublist)
        edge_copied_list.append(list(sublist))
    edge_weight_list = [item for sublist in edge_copied_list for item in sublist]

    edge_index = jnp.array([src, dst], dtype=jnp.int32)
    edge_weight_arr = jnp.array(edge_weight_list, dtype=jnp.float32)
    batch = jnp.repeat(jnp.arange(n_graphs, dtype=jnp.int32), n_per_graph)

    params = init_params(k_param, hidden_dim, output_dim, n_layers)

    out = gnn_encoder_forward(params, node_feature, edge_index, edge_weight_arr,
                              batch, n_graphs, hidden_dim, n_layers)
    out = jax.block_until_ready(out)
    assert out.shape == (n_graphs, output_dim), out.shape
    print("KERNEL_OK")
</pallas_src>

<mosaic_0001>
module attributes {stable_mosaic.version = 11 : i64} {
  func.func @_linear_kernel(%arg0: i32, %arg1: memref<64x8xf32, #tpu.memory_space<vmem>>, %arg2: memref<8x16xf32, #tpu.memory_space<vmem>>, %arg3: memref<1x16xf32, #tpu.memory_space<vmem>>, %arg4: memref<64x16xf32, #tpu.memory_space<vmem>>) attributes {dimension_semantics = [#tpu.dimension_semantics<parallel>], iteration_bounds = array<i64: 2>, scalar_prefetch = 0 : i64, scratch_operands = 0 : i64, tpu.core_type = #tpu.core_type<tc>, window_params = [{transform_indices = @transform_0, window_bounds = array<i64: 64, 8>}, {pipeline_mode = #tpu.pipeline_mode<synchronous>, transform_indices = @transform_1, window_bounds = array<i64: 8, 16>}, {pipeline_mode = #tpu.pipeline_mode<synchronous>, transform_indices = @transform_2, window_bounds = array<i64: 1, 16>}, {transform_indices = @transform_3, window_bounds = array<i64: 64, 16>}]} {
    %c0 = arith.constant 0 : index
    %c0_0 = arith.constant 0 : index
    %0 = vector.load %arg1[%c0, %c0_0] : memref<64x8xf32, #tpu.memory_space<vmem>>, vector<64x8xf32>
    %c0_1 = arith.constant 0 : index
    %c0_2 = arith.constant 0 : index
    %1 = vector.load %arg2[%c0_1, %c0_2] : memref<8x16xf32, #tpu.memory_space<vmem>>, vector<8x16xf32>
    %cst = arith.constant dense<0.000000e+00> : vector<64x16xf32>
    %2 = tpu.matmul %0, %1, %cst {dimension_numbers = #tpu.dot_dimension_numbers<[1], [0], [0], [1], [0, 0, 1, 1], [], []>} : vector<64x8xf32>, vector<8x16xf32>, vector<64x16xf32> -> vector<64x16xf32>
    %c0_3 = arith.constant 0 : index
    %c0_4 = arith.constant 0 : index
    %3 = vector.load %arg3[%c0_3, %c0_4] : memref<1x16xf32, #tpu.memory_space<vmem>>, vector<1x16xf32>
    %4 = vector.broadcast %3 : vector<1x16xf32> to vector<64x16xf32>
    %5 = arith.addf %2, %4 : vector<64x16xf32>
    %c0_5 = arith.constant 0 : index
    %c0_6 = arith.constant 0 : index
    %6 = vector.load %arg4[%c0_5, %c0_6] : memref<64x16xf32, #tpu.memory_space<vmem>>, vector<64x16xf32>
    tpu.vector_store %arg4[%c0_5, %c0_6], %5 {strides = array<i32>} : memref<64x16xf32, #tpu.memory_space<vmem>>, vector<64x16xf32>,
    return
  }
  func.func @transform_0(%arg0: i32) -> (i32, i32) {
    %c0_i32 = arith.constant 0 : i32
    %c0_i32_0 = arith.constant 0 : i32
    return %arg0, %c0_i32 : i32, i32
  }
  func.func @transform_1(%arg0: i32) -> (i32, i32) {
    %c0_i32 = arith.constant 0 : i32
    %c0_i32_0 = arith.constant 0 : i32
    %c0_i32_1 = arith.constant 0 : i32
    return %c0_i32, %c0_i32_0 : i32, i32
  }
  func.func @transform_2(%arg0: i32) -> (i32, i32) {
    %c0_i32 = arith.constant 0 : i32
    %c0_i32_0 = arith.constant 0 : i32
    %c0_i32_1 = arith.constant 0 : i32
    return %c0_i32, %c0_i32_0 : i32, i32
  }
  func.func @transform_3(%arg0: i32) -> (i32, i32) {
    %c0_i32 = arith.constant 0 : i32
    %c0_i32_0 = arith.constant 0 : i32
    return %arg0, %c0_i32 : i32, i32
  }
}

</mosaic_0001>

<bundles_post_ra>
// kernel: tpu_custom_call.1
= control target key start
LH: loop header
LB: loop body
LE: loop exit
PB: predicated region body
PF: predicated region fallthrough
CT: control target
= control target key end

     0   :  { %s466_s12 = smov 0   ;;  %s505_s0 = inlined_call_operand.vmem [shape: f32[128,8], index: 0, kind: input, shape index: {}]   ;;  %s506_s1 = inlined_call_operand.vmem [shape: f32[8,16], index: 1, kind: input, shape index: {}]   ;;  %s507_s2 = inlined_call_operand.vmem [shape: f32[1,16], index: 2, kind: input, shape index: {}]   ;;  %s508_s3 = inlined_call_operand.vmem [shape: f32[128,16], index: 3, kind: output, shape index: {}]  }
   0x1 LB: > { %s385_s13 = sadd.s32 4294967295, %s444_s12   ;;  %p389_p0 = scmp.ge.s32.totalorder %s444_s12, 1  ;;  %s444_s12 = sphi %s466_s12, %s13_s12  }
   0x2   : > { %p138_p1 = scmp.lt.s32.totalorder %s444_s12, 3 }
   0x4   : > { %p139_p2 = pnand %p389_p0, %p138_p1 }
   0x5   : > { %s390_s16 = sshll.u32 (!%p139_p2), %s385_s13, 3 }
   0x6   : > { %142 = sbr.rel (%p139_p2) target bundleno = 219 (0xdb), region = 32  ;;  %p163_p3 = scmp.lt.s32.totalorder (!%p139_p2), %s390_s16, 15 }
   0xb   : > { %v182_v0 = vld [vmem:[%s506_s1] sm:$0xff]  ;;  %s510_s16 = smov (!%p163_p3, %s390_s16), 15  ;;  %vm190_vm0 = vcmask 64512   ;;  %vm320_vm1 = vcmask 130048  }
   0xc   : > { %414 = vmatprep.subr.mxu0 %v182_v0  ;;  %428 = vmatprep.subr.mxu1 %v182_v0  ;;  %s391_s17 = sshll.u32 %s510_s16, 3  ;;  %v394_v9 = vld [vmem:[%s507_s2] ss:$0 sm:$0xff] }
   0xd   : > { %415 = vmatpush3.msra.mxu0 %v182_v0  ;;  %429 = vmatpush3.msra.mxu1 %v182_v0  ;;  %s166_s20 = scalar_lea.vmem %s505_s0, %s391_s17  ;;  %s172_s25 = scalar_lea.vmem %s508_s3, %s391_s17 }
   0xe   : > { %v174_v1 = vld [vmem:[%s166_s20] sm:$0xff]  ;;  %v175_v3 = vld [vmem:[%s166_s20 + $0x8] sm:$0xff]  ;;  %v176_v5 = vld [vmem:[%s166_s20 + $0x10] sm:$0xff] }
   0xf   : > { %v178_v2 = vld [vmem:[%s166_s20 + $0x20] sm:$0xff]  ;;  %416 = vmatprep.mubr.msk.f32.mxu0 %vm190_vm0, %v174_v1  ;;  %v179_v4 = vld [vmem:[%s166_s20 + $0x28] sm:$0xff]  ;;  %v180_v6 = vld [vmem:[%s166_s20 + $0x30] sm:$0xff] }
  0x10   : > { %422 = vmatprep.mubr.msk.f32.mxu1 %vm190_vm0, %v178_v2  ;;  %417 = vmatmul.mubr.msk.f32.vlgmr.msra.gmra.mxu0 %vm190_vm0, %v175_v3  ;;  %v177_v7 = vld [vmem:[%s166_s20 + $0x18] sm:$0xff] }
  0x11   : > { %423 = vmatmul.mubr.msk.f32.vlgmr.msra.gmra.mxu1 %vm190_vm0, %v179_v4  ;;  %419 = vmatprep.mubr.msk.f32.mxu0 %vm190_vm0, %v176_v5  ;;  %v181_v8 = vld [vmem:[%s166_s20 + $0x38] sm:$0xff] }
  0x12   : > { %425 = vmatprep.mubr.msk.f32.mxu1 %vm190_vm0, %v180_v6 }
  0x14   : > { %420 = vmatmul.mubr.msk.f32.gmra.mxu0 %vm190_vm0, %v177_v7 }
  0x15   : > { %426 = vmatmul.mubr.msk.f32.gmra.mxu1 %vm190_vm0, %v181_v8 }
  0xd0   : > { %v418_v10 = vpop.f32.mrf.mxu0 }
  0xd1   : > { %v424_v11 = vpop.f32.mrf.mxu1  ;;  %v287_v12 = vadd.f32 %v418_v10, %v394_v9 }
  0xd2   : > { %v307_v13 = vadd.f32 %v424_v11, %v394_v9  ;;  %v281_v14 = vpop.f32.mrf.mxu0 }
  0xd3   : > { %v301_v15 = vpop.f32.mrf.mxu1  ;;  %322 = vst.msk [vmem:[%s172_s25 + $0x8] sm:$0xff] %vm320_vm1, %v287_v12  ;;  %v282_v16 = vadd.f32 %v394_v9, %v281_v14 }
  0xd4   : > { %326 = vst.msk [vmem:[%s172_s25 + $0x28] sm:$0xff] %vm320_vm1, %v307_v13  ;;  %v302_v17 = vadd.f32 %v394_v9, %v301_v15  ;;  %v421_v18 = vpop.f32.mrf.mxu0 }
  0xd5   : > { %v427_v19 = vpop.f32.mrf.mxu1  ;;  %321 = vst.msk [vmem:[%s172_s25] sm:$0xff] %vm320_vm1, %v282_v16  ;;  %v297_v20 = vadd.f32 %v421_v18, %v394_v9 }
  0xd6   : > { %325 = vst.msk [vmem:[%s172_s25 + $0x20] sm:$0xff] %vm320_vm1, %v302_v17  ;;  %v317_v21 = vadd.f32 %v427_v19, %v394_v9  ;;  %v291_v22 = vpop.f32.mrf.mxu0 }
  0xd7   : > { %v311_v23 = vpop.f32.mrf.mxu1  ;;  %324 = vst.msk [vmem:[%s172_s25 + $0x18] sm:$0xff] %vm320_vm1, %v297_v20  ;;  %v292_v24 = vadd.f32 %v394_v9, %v291_v22 }
  0xd8   : > { %328 = vst.msk [vmem:[%s172_s25 + $0x38] sm:$0xff] %vm320_vm1, %v317_v21  ;;  %v312_v25 = vadd.f32 %v394_v9, %v311_v23 }
  0xd9   : > { %323 = vst.msk [vmem:[%s172_s25 + $0x10] sm:$0xff] %vm320_vm1, %v292_v24 }
  0xda   : > { %327 = vst.msk [vmem:[%s172_s25 + $0x30] sm:$0xff] %vm320_vm1, %v312_v25 }
  0xdb PF: > { %s13_s12 = sadd.s32 1, %s444_s12  }
  0xdc   : > { %p10_p4 = scmp.ge.s32.totalorder %s13_s12, 4  }
  0xde   :  { %12 = sbr.rel (!%p10_p4) target bundleno = 1 (0x1), region = 62 }

</bundles_post_ra>
